<compile_context>
chip_gen: v7x
topology: tpu7x:2x2x1
jax: 0.10.0
libtpu: 0.0.40
codegen_flags: <defaults>
</compile_context>

<pallas_src>
import jax
import jax.numpy as jnp
from jax import lax
from jax.experimental import pallas as pl
from jax.experimental.pallas import tpu as pltpu

LANE = 128          # lane width
TR_MIN = 128        # minimum block rows (keeps every kernel shape lane-friendly)
TR_MAX = 512        # block rows per grid step (TR * LANE = 65536 elements / step)
NEG_BIG = -1.0e30   # padding sentinel: relu() == 0 -> zero loss contribution


# ---------------------------------------------------------------------------
# Kernel: Lovasz gradient + reduction over blocks of the sorted stream.
#   gts_ref   : (1, 1)  f32   total number of positives (wrapper-side reduction)
#   e_ref     : (TR, L) f32   errors, sorted descending (padded tail = NEG_BIG)
#   gt_ref    : (TR, L) f32   labels permuted by the same sort (padded tail = 0)
#   o_ref     : (1, 1)  f32   loss accumulator (pinned output block)
#   carry_ref : (1, 1)  f32   running cumsum(gt) from all earlier blocks
#   tri_ref   : (L, L)  bf16  upper-triangular ones  (within-row inclusive cumsum)
#   strict_ref: (TR,TR) bf16  strictly-lower-triangular ones (cross-row prefix)
#   kpos_ref  : (TR, L) f32   block-local 1-based flattened position
# ---------------------------------------------------------------------------
def _lovasz_kernel(gts_ref, e_ref, gt_ref, o_ref,
                   carry_ref, tri_ref, strict_ref, kpos_ref):
    f32 = jnp.float32
    bf16 = jnp.bfloat16
    pid = pl.program_id(0)
    TR, L = gt_ref.shape

    @pl.when(pid == 0)
    def _init():
        o_ref[...] = jnp.zeros_like(o_ref)
        carry_ref[...] = jnp.zeros_like(carry_ref)
        li = lax.broadcasted_iota(jnp.int32, (L, L), 0)
        lj = lax.broadcasted_iota(jnp.int32, (L, L), 1)
        tri_ref[...] = (li <= lj).astype(bf16)          # 0/1 -> bf16 is lossless
        ri = lax.broadcasted_iota(jnp.int32, (TR, TR), 0)
        rj = lax.broadcasted_iota(jnp.int32, (TR, TR), 1)
        strict_ref[...] = (rj < ri).astype(bf16)
        r_idx = lax.broadcasted_iota(jnp.int32, (TR, L), 0)
        j_idx = lax.broadcasted_iota(jnp.int32, (TR, L), 1)
        kpos_ref[...] = (r_idx * L + j_idx + 1).astype(f32)

    x = gt_ref[...]                   # (TR, L) f32 in {0, 1}; padded tail is 0
    e = e_ref[...]                    # (TR, L) f32 sorted (descending) errors
    gts = gts_ref[...]                # (1, 1) f32 total positives (broadcasts)
    carry = carry_ref[...]            # (1, 1) cumsum(gt) over all earlier blocks

    # ---- inclusive cumsum of gt over the global flattened (sorted) order ----
    x16 = x.astype(bf16)
    # within-row inclusive cumsum:  x @ upper_tri   (MXU, bf16 in / f32 accumulate)
    row_csum = jnp.dot(x16, tri_ref[...], preferred_element_type=f32)       # (TR, L)
    # total of strictly-earlier rows inside the block:  sum_l (strict @ x)
    prev_rows = jnp.sum(jnp.dot(strict_ref[...], x16, preferred_element_type=f32),
                        axis=1, keepdims=True)                              # (TR, 1)
    csum = row_csum + prev_rows + carry                                     # (TR, L)

    # global 1-based flattened position k+1
    base = (pid * (TR * L)).astype(f32)
    # TODO(synk): f32 positions/cumsum lose integer exactness past ~2^24 elements,
    # matching the float32 reference's own drift regime for such sizes.
    kpos1 = kpos_ref[...] + base

    # ---- jaccard at position k and at k-1  ->  lovasz_grad -----------------
    union = gts + kpos1 - csum                        # >= 1 at every position
    jaccard = 1.0 - (gts - csum) / union

    csum_prev = csum - x                              # cumsum at position k-1
    union_prev = gts + (kpos1 - 1.0) - csum_prev
    denom = jnp.where(union_prev > 0.0, union_prev, 1.0)   # zero only at k==0 with gts==0
    jac_prev = jnp.where(union_prev > 0.0,
                         1.0 - (gts - csum_prev) / denom, 0.0)

    grad = jaccard - jac_prev                         # lovasz_grad(gt_sorted), this block
    contrib = jnp.maximum(e, 0.0) * grad              # relu(errors_sorted) * grad

    partial = jnp.sum(jnp.sum(contrib, axis=1, keepdims=True),
                      axis=0, keepdims=True)                                 # (1, 1)
    block_gt = jnp.sum(jnp.sum(x, axis=1, keepdims=True),
                       axis=0, keepdims=True)                                # (1, 1)

    o_ref[...] += partial
    carry_ref[...] = carry + block_gt


# ---------------------------------------------------------------------------
# Wrapper (per_image=False, ignore=None)
# ---------------------------------------------------------------------------
def _choose_tiling(n):
    r0 = -(-n // LANE)                                 # rows of 128 lanes
    tr = min(TR_MAX, -(-r0 // TR_MIN) * TR_MIN)        # block rows, multiple of 128
    r = -(-r0 // tr) * tr                              # padded rows, multiple of tr
    return r, tr


@jax.jit
def binary_lovasz_loss(prediction, target):
    """Forward of BinaryLovaszLoss(per_image=False, ignore=None)."""
    logits = prediction.reshape(-1).astype(jnp.float32)
    labels = target.reshape(-1).astype(jnp.float32)
    n = logits.shape[0]

    # hinge errors (fused by XLA into the sort operand — no Pallas round-trip)
    signs = 2.0 * labels - 1.0
    errors = 1.0 - logits * signs

    # single sort pass: key = -errors (ascending <=> errors descending), labels ride along
    neg_sorted, gt_sorted = lax.sort((-errors, labels), num_keys=1, is_stable=False)
    e_sorted = -neg_sorted

    gts = jnp.sum(labels).reshape(1, 1)                # total positives (f32)

    R, TR = _choose_tiling(n)
    pad = R * LANE - n
    # pad AFTER the sort: sentinel errors relu to 0 and labels are 0 -> zero contribution
    e_p = jnp.pad(e_sorted, (0, pad), constant_values=NEG_BIG).reshape(R, LANE)
    gt_p = jnp.pad(gt_sorted, (0, pad), constant_values=0.0).reshape(R, LANE)

    steps = R // TR
    flops = steps * (2 * TR * LANE * LANE + 2 * TR * TR * LANE + 30 * TR * LANE)
    loss = pl.pallas_call(
        _lovasz_kernel,
        out_shape=jax.ShapeDtypeStruct((1, 1), jnp.float32),
        grid=(steps,),
        in_specs=[
            pl.BlockSpec((1, 1), lambda i: (0, 0)),        # gts (stays resident)
            pl.BlockSpec((TR, LANE), lambda i: (i, 0)),    # sorted errors
            pl.BlockSpec((TR, LANE), lambda i: (i, 0)),    # sorted labels
        ],
        out_specs=pl.BlockSpec((1, 1), lambda i: (0, 0)),  # pinned scalar accumulator
        scratch_shapes=[
            pltpu.VMEM((1, 1), jnp.float32),               # carried cumsum(gt) offset
            pltpu.VMEM((LANE, LANE), jnp.bfloat16),        # upper-triangular ones
            pltpu.VMEM((TR, TR), jnp.bfloat16),            # strict lower-triangular ones
            pltpu.VMEM((TR, LANE), jnp.float32),           # block-local positions
        ],
        compiler_params=pltpu.CompilerParams(
            dimension_semantics=("arbitrary",)),           # sequential carry across blocks
        cost_estimate=pl.CostEstimate(
            flops=int(flops), transcendentals=0,
            bytes_accessed=int(2 * R * LANE * 4 + 12)),
    )(gts, e_p, gt_p)
    return loss[0, 0]


# ---------------------------------------------------------------------------
# Pure-JAX reference (mirrors the PyTorch module) for a sanity check.
# ---------------------------------------------------------------------------
def _reference_loss(prediction, target):
    logits = prediction.reshape(-1).astype(jnp.float32)
    labels = target.reshape(-1).astype(jnp.float32)
    signs = 2.0 * labels - 1.0
    errors = 1.0 - logits * signs
    perm = jnp.argsort(-errors)
    e_s = errors[perm]
    gt_s = labels[perm]
    gts = gt_s.sum()
    intersection = gts - jnp.cumsum(gt_s)
    union = gts + jnp.cumsum(1.0 - gt_s)
    jac = 1.0 - intersection / union
    grad = jnp.concatenate([jac[:1], jac[1:] - jac[:-1]])
    return jnp.dot(jnp.maximum(e_s, 0.0), grad)


if __name__ == "__main__":
    key = jax.random.PRNGKey(0)
    k1, k2 = jax.random.split(key)
    # NCHW, like the PyTorch module would receive.
    prediction = jax.random.normal(k1, (2, 4, 16, 16), dtype=jnp.float32)
    target = (jax.random.uniform(k2, (2, 4, 16, 16)) > 0.5).astype(jnp.float32)

    loss = jax.block_until_ready(binary_lovasz_loss(prediction, target))
    ref = _reference_loss(prediction, target)
    assert jnp.allclose(loss, ref, rtol=1e-4, atol=1e-5), (loss, ref)
    print("KERNEL_OK")
</pallas_src>

<mosaic_0001>
module attributes {stable_mosaic.version = 11 : i64} {
  func.func @_lovasz_kernel(%arg0: i32, %arg1: memref<1x1xf32, #tpu.memory_space<vmem>>, %arg2: memref<128x128xf32, #tpu.memory_space<vmem>>, %arg3: memref<128x128xf32, #tpu.memory_space<vmem>>, %arg4: memref<1x1xf32, #tpu.memory_space<vmem>>, %arg5: memref<1x1xf32, #tpu.memory_space<vmem>>, %arg6: memref<128x128xbf16, #tpu.memory_space<vmem>>, %arg7: memref<128x128xbf16, #tpu.memory_space<vmem>>, %arg8: memref<128x128xf32, #tpu.memory_space<vmem>>) attributes {dimension_semantics = [#tpu.dimension_semantics<arbitrary>], iteration_bounds = array<i64: 1>, scalar_prefetch = 0 : i64, scratch_operands = 4 : i64, tpu.core_type = #tpu.core_type<tc>, window_params = [{pipeline_mode = #tpu.pipeline_mode<synchronous>, transform_indices = @transform_0, window_bounds = array<i64: 1, 1>}, {transform_indices = @transform_1, window_bounds = array<i64: 128, 128>}, {transform_indices = @transform_2, window_bounds = array<i64: 128, 128>}, {pipeline_mode = #tpu.pipeline_mode<synchronous>, transform_indices = @transform_3, window_bounds = array<i64: 1, 1>}]} {
    %c0_i32 = arith.constant 0 : i32
    %0 = arith.cmpi eq, %arg0, %c0_i32 : i32
    %1 = arith.extui %0 : i1 to i32
    %c0_i32_0 = arith.constant 0 : i32
    %2 = arith.cmpi ne, %1, %c0_i32_0 : i32
    scf.if %2 {
      %cst_34 = arith.constant 0.000000e+00 : f32
      %67 = vector.broadcast %cst_34 : f32 to vector<1x1xf32>
      %c0_35 = arith.constant 0 : index
      %c0_36 = arith.constant 0 : index
      %68 = vector.load %arg4[%c0_35, %c0_36] : memref<1x1xf32, #tpu.memory_space<vmem>>, vector<1x1xf32>
      tpu.vector_store %arg4[%c0_35, %c0_36], %67 {strides = array<i32>} : memref<1x1xf32, #tpu.memory_space<vmem>>, vector<1x1xf32>,
      %cst_37 = arith.constant 0.000000e+00 : f32
      %69 = vector.broadcast %cst_37 : f32 to vector<1x1xf32>
      %c0_38 = arith.constant 0 : index
      %c0_39 = arith.constant 0 : index
      %70 = vector.load %arg5[%c0_38, %c0_39] : memref<1x1xf32, #tpu.memory_space<vmem>>, vector<1x1xf32>
      tpu.vector_store %arg5[%c0_38, %c0_39], %69 {strides = array<i32>} : memref<1x1xf32, #tpu.memory_space<vmem>>, vector<1x1xf32>,
      %71 = tpu.iota {dimensions = array<i32: 0>} : vector<128x128xi32>
      %72 = tpu.iota {dimensions = array<i32: 1>} : vector<128x128xi32>
      %73 = arith.cmpi sle, %71, %72 : vector<128x128xi32>
      %74 = arith.extui %73 : vector<128x128xi1> to vector<128x128xi32>
      %75 = arith.sitofp %74 : vector<128x128xi32> to vector<128x128xf32>
      %76 = arith.truncf %75 : vector<128x128xf32> to vector<128x128xbf16>
      %c0_40 = arith.constant 0 : index
      %c0_41 = arith.constant 0 : index
      %77 = vector.load %arg6[%c0_40, %c0_41] : memref<128x128xbf16, #tpu.memory_space<vmem>>, vector<128x128xbf16>
      tpu.vector_store %arg6[%c0_40, %c0_41], %76 {strides = array<i32>} : memref<128x128xbf16, #tpu.memory_space<vmem>>, vector<128x128xbf16>,
      %78 = tpu.iota {dimensions = array<i32: 0>} : vector<128x128xi32>
      %79 = tpu.iota {dimensions = array<i32: 1>} : vector<128x128xi32>
      %80 = arith.cmpi slt, %79, %78 : vector<128x128xi32>
      %81 = arith.extui %80 : vector<128x128xi1> to vector<128x128xi32>
      %82 = arith.sitofp %81 : vector<128x128xi32> to vector<128x128xf32>
      %83 = arith.truncf %82 : vector<128x128xf32> to vector<128x128xbf16>
      %c0_42 = arith.constant 0 : index
      %c0_43 = arith.constant 0 : index
      %84 = vector.load %arg7[%c0_42, %c0_43] : memref<128x128xbf16, #tpu.memory_space<vmem>>, vector<128x128xbf16>
      tpu.vector_store %arg7[%c0_42, %c0_43], %83 {strides = array<i32>} : memref<128x128xbf16, #tpu.memory_space<vmem>>, vector<128x128xbf16>,
      %85 = tpu.iota {dimensions = array<i32: 0>} : vector<128x128xi32>
      %86 = tpu.iota {dimensions = array<i32: 1>} : vector<128x128xi32>
      %c128_i32 = arith.constant 128 : i32
      %87 = vector.broadcast %c128_i32 : i32 to vector<128x128xi32>
      %88 = arith.muli %85, %87 : vector<128x128xi32>
      %89 = arith.addi %88, %86 : vector<128x128xi32>
      %c1_i32 = arith.constant 1 : i32
      %90 = vector.broadcast %c1_i32 : i32 to vector<128x128xi32>
      %91 = arith.addi %89, %90 : vector<128x128xi32>
      %92 = arith.sitofp %91 : vector<128x128xi32> to vector<128x128xf32>
      %c0_44 = arith.constant 0 : index
      %c0_45 = arith.constant 0 : index
      %93 = vector.load %arg8[%c0_44, %c0_45] : memref<128x128xf32, #tpu.memory_space<vmem>>, vector<128x128xf32>
      tpu.vector_store %arg8[%c0_44, %c0_45], %92 {strides = array<i32>} : memref<128x128xf32, #tpu.memory_space<vmem>>, vector<128x128xf32>,
    } else {
    }
    %c0 = arith.constant 0 : index
    %c0_1 = arith.constant 0 : index
    %3 = vector.load %arg3[%c0, %c0_1] : memref<128x128xf32, #tpu.memory_space<vmem>>, vector<128x128xf32>
    %c0_2 = arith.constant 0 : index
    %c0_3 = arith.constant 0 : index
    %4 = vector.load %arg2[%c0_2, %c0_3] : memref<128x128xf32, #tpu.memory_space<vmem>>, vector<128x128xf32>
    %c0_4 = arith.constant 0 : index
    %c0_5 = arith.constant 0 : index
    %5 = vector.load %arg1[%c0_4, %c0_5] : memref<1x1xf32, #tpu.memory_space<vmem>>, vector<1x1xf32>
    %c0_6 = arith.constant 0 : index
    %c0_7 = arith.constant 0 : index
    %6 = vector.load %arg5[%c0_6, %c0_7] : memref<1x1xf32, #tpu.memory_space<vmem>>, vector<1x1xf32>
    %7 = arith.truncf %3 : vector<128x128xf32> to vector<128x128xbf16>
    %c0_8 = arith.constant 0 : index
    %c0_9 = arith.constant 0 : index
    %8 = vector.load %arg6[%c0_8, %c0_9] : memref<128x128xbf16, #tpu.memory_space<vmem>>, vector<128x128xbf16>
    %cst = arith.constant dense<0.000000e+00> : vector<128x128xf32>
    %9 = tpu.matmul %7, %8, %cst {dimension_numbers = #tpu.dot_dimension_numbers<[1], [0], [0], [1], [0, 0, 1, 1], [], []>} : vector<128x128xbf16>, vector<128x128xbf16>, vector<128x128xf32> -> vector<128x128xf32>
    %c0_10 = arith.constant 0 : index
    %c0_11 = arith.constant 0 : index
    %10 = vector.load %arg7[%c0_10, %c0_11] : memref<128x128xbf16, #tpu.memory_space<vmem>>, vector<128x128xbf16>
    %cst_12 = arith.constant dense<0.000000e+00> : vector<128x128xf32>
    %11 = tpu.matmul %10, %7, %cst_12 {dimension_numbers = #tpu.dot_dimension_numbers<[1], [0], [0], [1], [0, 0, 1, 1], [], []>} : vector<128x128xbf16>, vector<128x128xbf16>, vector<128x128xf32> -> vector<128x128xf32>
    %cst_13 = arith.constant dense<0.000000e+00> : vector<128xf32>
    %12 = vector.multi_reduction <add>, %11, %cst_13 [1] : vector<128x128xf32> to vector<128xf32>
    %13 = vector.shape_cast %12 : vector<128xf32> to vector<128x1xf32>
    %14 = vector.broadcast %13 : vector<128x1xf32> to vector<128x128xf32>
    %15 = arith.addf %9, %14 : vector<128x128xf32>
    %16 = vector.broadcast %6 : vector<1x1xf32> to vector<128x128xf32>
    %17 = arith.addf %15, %16 : vector<128x128xf32>
    %c16384_i32 = arith.constant 16384 : i32
    %18 = arith.muli %arg0, %c16384_i32 : i32
    %19 = arith.sitofp %18 : i32 to f32
    %c0_14 = arith.constant 0 : index
    %c0_15 = arith.constant 0 : index
    %20 = vector.load %arg8[%c0_14, %c0_15] : memref<128x128xf32, #tpu.memory_space<vmem>>, vector<128x128xf32>
    %21 = vector.broadcast %19 : f32 to vector<128x128xf32>
    %22 = arith.addf %20, %21 : vector<128x128xf32>
    %23 = vector.broadcast %5 : vector<1x1xf32> to vector<128x128xf32>
    %24 = arith.addf %23, %22 : vector<128x128xf32>
    %25 = arith.subf %24, %17 : vector<128x128xf32>
    %26 = vector.broadcast %5 : vector<1x1xf32> to vector<128x128xf32>
    %27 = arith.subf %26, %17 : vector<128x128xf32>
    %28 = arith.divf %27, %25 : vector<128x128xf32>
    %cst_16 = arith.constant 1.000000e+00 : f32
    %29 = vector.broadcast %cst_16 : f32 to vector<128x128xf32>
    %30 = arith.subf %29, %28 : vector<128x128xf32>
    %31 = arith.subf %17, %3 : vector<128x128xf32>
    %cst_17 = arith.constant 1.000000e+00 : f32
    %32 = vector.broadcast %cst_17 : f32 to vector<128x128xf32>
    %33 = arith.subf %22, %32 : vector<128x128xf32>
    %34 = vector.broadcast %5 : vector<1x1xf32> to vector<128x128xf32>
    %35 = arith.addf %34, %33 : vector<128x128xf32>
    %36 = arith.subf %35, %31 : vector<128x128xf32>
    %cst_18 = arith.constant 0.000000e+00 : f32
    %37 = vector.broadcast %cst_18 : f32 to vector<128x128xf32>
    %38 = arith.cmpf ogt, %36, %37 : vector<128x128xf32>
    %cst_19 = arith.constant 1.000000e+00 : f32
    %39 = vector.broadcast %cst_19 : f32 to vector<128x128xf32>
    %40 = arith.select %38, %36, %39 : vector<128x128xi1>, vector<128x128xf32>
    %cst_20 = arith.constant 0.000000e+00 : f32
    %41 = vector.broadcast %cst_20 : f32 to vector<128x128xf32>
    %42 = arith.cmpf ogt, %36, %41 : vector<128x128xf32>
    %43 = vector.broadcast %5 : vector<1x1xf32> to vector<128x128xf32>
    %44 = arith.subf %43, %31 : vector<128x128xf32>
    %45 = arith.divf %44, %40 : vector<128x128xf32>
    %cst_21 = arith.constant 1.000000e+00 : f32
    %46 = vector.broadcast %cst_21 : f32 to vector<128x128xf32>
    %47 = arith.subf %46, %45 : vector<128x128xf32>
    %cst_22 = arith.constant 0.000000e+00 : f32
    %48 = vector.broadcast %cst_22 : f32 to vector<128x128xf32>
    %49 = arith.select %42, %47, %48 : vector<128x128xi1>, vector<128x128xf32>
    %50 = arith.subf %30, %49 : vector<128x128xf32>
    %cst_23 = arith.constant 0.000000e+00 : f32
    %51 = vector.broadcast %cst_23 : f32 to vector<128x128xf32>
    %52 = arith.maximumf %4, %51 : vector<128x128xf32>
    %53 = arith.mulf %52, %50 : vector<128x128xf32>
    %cst_24 = arith.constant dense<0.000000e+00> : vector<128xf32>
    %54 = vector.multi_reduction <add>, %53, %cst_24 [1] : vector<128x128xf32> to vector<128xf32>
    %55 = vector.shape_cast %54 : vector<128xf32> to vector<128x1xf32>
    %cst_25 = arith.constant dense<0.000000e+00> : vector<1xf32>
    %56 = vector.multi_reduction <add>, %55, %cst_25 [0] : vector<128x1xf32> to vector<1xf32>
    %57 = vector.shape_cast %56 : vector<1xf32> to vector<1x1xf32>
    %cst_26 = arith.constant dense<0.000000e+00> : vector<128xf32>
    %58 = vector.multi_reduction <add>, %3, %cst_26 [1] : vector<128x128xf32> to vector<128xf32>
    %59 = vector.shape_cast %58 : vector<128xf32> to vector<128x1xf32>
    %cst_27 = arith.constant dense<0.000000e+00> : vector<1xf32>
    %60 = vector.multi_reduction <add>, %59, %cst_27 [0] : vector<128x1xf32> to vector<1xf32>
    %61 = vector.shape_cast %60 : vector<1xf32> to vector<1x1xf32>
    %c0_28 = arith.constant 0 : index
    %c0_29 = arith.constant 0 : index
    %62 = vector.load %arg4[%c0_28, %c0_29] : memref<1x1xf32, #tpu.memory_space<vmem>>, vector<1x1xf32>
    %63 = arith.addf %62, %57 : vector<1x1xf32>
    %c0_30 = arith.constant 0 : index
    %c0_31 = arith.constant 0 : index
    %64 = vector.load %arg4[%c0_30, %c0_31] : memref<1x1xf32, #tpu.memory_space<vmem>>, vector<1x1xf32>
    tpu.vector_store %arg4[%c0_30, %c0_31], %63 {strides = array<i32>} : memref<1x1xf32, #tpu.memory_space<vmem>>, vector<1x1xf32>,
    %65 = arith.addf %6, %61 : vector<1x1xf32>
    %c0_32 = arith.constant 0 : index
    %c0_33 = arith.constant 0 : index
    %66 = vector.load %arg5[%c0_32, %c0_33] : memref<1x1xf32, #tpu.memory_space<vmem>>, vector<1x1xf32>
    tpu.vector_store %arg5[%c0_32, %c0_33], %65 {strides = array<i32>} : memref<1x1xf32, #tpu.memory_space<vmem>>, vector<1x1xf32>,
    return
  }
  func.func @transform_0(%arg0: i32) -> (i32, i32) {
    %c0_i32 = arith.constant 0 : i32
    %c0_i32_0 = arith.constant 0 : i32
    %c0_i32_1 = arith.constant 0 : i32
    return %c0_i32, %c0_i32_0 : i32, i32
  }
  func.func @transform_1(%arg0: i32) -> (i32, i32) {
    %c0_i32 = arith.constant 0 : i32
    %c0_i32_0 = arith.constant 0 : i32
    return %arg0, %c0_i32 : i32, i32
  }
  func.func @transform_2(%arg0: i32) -> (i32, i32) {
    %c0_i32 = arith.constant 0 : i32
    %c0_i32_0 = arith.constant 0 : i32
    return %arg0, %c0_i32 : i32, i32
  }
  func.func @transform_3(%arg0: i32) -> (i32, i32) {
    %c0_i32 = arith.constant 0 : i32
    %c0_i32_0 = arith.constant 0 : i32
    %c0_i32_1 = arith.constant 0 : i32
    return %c0_i32, %c0_i32_0 : i32, i32
  }
}

</mosaic_0001>

<bundles_post_ra>
// kernel: neg.3
= control target key start
LH: loop header
LB: loop body
LE: loop exit
PB: predicated region body
PF: predicated region fallthrough
CT: control target
= control target key end

     0   :  { %s40_s0 = inlined_call_operand.vmem [shape: f32[2048], index: 0, kind: input, shape index: {}]   ;;  %s41_s1 = inlined_call_operand.vmem [shape: f32[2048], index: 1, kind: output, shape index: {}]  }
   0x1   :  { %v2_v0 = vld [vmem:[%s40_s0] sm:$0xff]  ;;  %v16_v1 = vld [vmem:[%s40_s0 + $0x8] sm:$0xff] }
   0x2   :  { %v5_v2 = vxor.u32 2147483648, %v2_v0  ;;  %v12_v3 = vxor.u32 2147483648, %v16_v1 }
   0x4   :  { %7 = vst [vmem:[%s41_s1] sm:$0xff] %v5_v2  ;;  %17 = vst [vmem:[%s41_s1 + $0x8] sm:$0xff] %v12_v3 }

// kernel: binary_lovasz_loss.1
= control target key start
LH: loop header
LB: loop body
LE: loop exit
PB: predicated region body
PF: predicated region fallthrough
CT: control target
= control target key end

     0   :  { %s2279_s0 = inlined_call_operand.<no memory space> [shape: f32[1,1], index: 0, kind: input, shape index: {}]   ;;  %s2280_s1 = inlined_call_operand.vmem [shape: f32[128,128], index: 1, kind: input, shape index: {}]   ;;  %s2281_s2 = inlined_call_operand.vmem [shape: f32[128,128], index: 2, kind: input, shape index: {}]   ;;  %s2282_s3 = inlined_call_operand.hbm [shape: f32[1,1], index: 3, kind: output, shape index: {}]  }
   0x1   :  { %v8_v0 = vstv %s2279_s0 }
   0x2   :  { %9 = vst [vmem:[#allocation6] sm:$0x1] %v8_v0 }
   0x3   :  { %v1358_v1 = vld [vmem:[%s2281_s2] sm:$0xff]  ;;  %v1363_v2 = vld [vmem:[%s2281_s2 + $0x8] sm:$0xff]  ;;  %v1368_v3 = vld [vmem:[%s2281_s2 + $0x10] sm:$0xff]  ;;  %v25_v4 = vlaneseq }
   0x4   :  { %v286_v5 = vpack.c.bf16 %v1363_v2, %v1358_v1  ;;  %v1375_v6 = vld [vmem:[%s2281_s2 + $0x18] sm:$0xff]  ;;  %v1384_v8 = vld [vmem:[%s2281_s2 + $0x20] sm:$0xff]  ;;  %v1389_v9 = vld [vmem:[%s2281_s2 + $0x28] sm:$0xff] }
   0x5   :  { %v1379_v7 = vpack.c.bf16 %v1375_v6, %v1368_v3  ;;  %v1391_v10 = vshrl.u32 %v25_v4, 7  ;;  %v1393_v11 = vand.u32 127, %v25_v4  ;;  %v1403_v13 = vpack.c.bf16 %v1389_v9, %v1384_v8 }
   0x6   :  { %1164 = vmatprep.subr.bf16.mxu0 %v286_v5  ;;  %1212 = vmatprep.mubr.bf16.mxu1 %v286_v5 }
   0x7   :  { %1165 = vmatpush3.bf16.msra.mxu0 %v286_v5  ;;  %v1396_v12 = vadd.s32 8, %v1391_v10  ;;  %vm108_vm0 = vcmp.lt.s32.totalorder %v1393_v11, %v1391_v10 }
   0x8   :  { %1166 = vmatprep.subr.bf16.mxu0 %v1379_v7 }
   0x9   :  { %10 = vsyncpa [#allocation8], 0  ;;  %v1408_v14 = vld [vmem:[%s2281_s2 + $0x30] sm:$0xff]  ;;  %v1413_v15 = vld [vmem:[%s2281_s2 + $0x38] sm:$0xff]  ;;  %vm109_vm1 = vcmp.lt.s32.totalorder %v1393_v11, %v1396_v12  ;;  %v1328_v16 = vmov 1.0|1.0   ;;  %vm44_vm3 = vcmp.le.s32.totalorder %v1391_v10, %v1393_v11  ;;  %vm45_vm4 = vcmp.le.s32.totalorder %v1396_v12, %v1393_v11 }
   0xa   :  { %vm1100_vm2 = vmpackc.low %vm109_vm1, %vm108_vm0  ;;  %v1422_v17 = vpack.c.bf16 %v1413_v15, %v1408_v14  ;;  %v1427_v18 = vld [vmem:[%s2281_s2 + $0x40] sm:$0xff]  ;;  %v1432_v19 = vld [vmem:[%s2281_s2 + $0x48] sm:$0xff]  ;;  %v1451_v23 = vadd.s32 16, %v1391_v10  ;;  %v1454_v24 = vadd.s32 24, %v1391_v10  ;;  %v1462_v25 = vadd.s32 32, %v1391_v10 }
   0xb   :  { %1167 = vmatpush3.bf16.msra.mxu0 %v1379_v7  ;;  %1180 = vmatprep.mubr.msk.bf16.mxu0 %vm1100_vm2, %v1328_v16  ;;  %v1438_v20 = vpack.c.bf16 %v1432_v19, %v1427_v18  ;;  %v1443_v21 = vld [vmem:[%s2281_s2 + $0x50] sm:$0xff]  ;;  %v1448_v22 = vld [vmem:[%s2281_s2 + $0x58] sm:$0xff]  ;;  %v1465_v26 = vadd.s32 40, %v1391_v10  ;;  %vm1116_vm5 = vmpackc.low %vm45_vm4, %vm44_vm3  ;;  %v1493_v30 = vadd.s32 48, %v1391_v10  ;;  %v1496_v31 = vadd.s32 56, %v1391_v10 }
   0xc   :  { %1168 = vmatprep.subr.bf16.mxu0 %v1403_v13  ;;  %vm46_vm6 = vcmp.le.s32.totalorder %v1451_v23, %v1393_v11  ;;  %vm47_vm7 = vcmp.le.s32.totalorder %v1454_v24, %v1393_v11  ;;  %v1474_v27 = vpack.c.bf16 %v1448_v22, %v1443_v21  ;;  %1196 = vmatprep.subr.msk.bf16.mxu1 %vm1116_vm5, %v1328_v16  ;;  %v1480_v28 = vld [vmem:[%s2281_s2 + $0x60] sm:$0xff]  ;;  %v1485_v29 = vld [vmem:[%s2281_s2 + $0x68] sm:$0xff]  ;;  %v1516_v34 = vld [vmem:[%s2281_s2 + $0x70] sm:$0xff]  ;;  %v1525_v36 = vadd.s32 64, %v1391_v10 }
   0xd   :  { %2285 = vst [vmem:[#allocation10_spill] sm:$0xff] %v1485_v29  ;;  %1197 = vmatpush3.bf16.msk.msra.mxu1 %vm1116_vm5, %v1328_v16  ;;  %vm48_vm8 = vcmp.le.s32.totalorder %v1462_v25, %v1393_v11  ;;  %vm49_vm9 = vcmp.le.s32.totalorder %v1465_v26, %v1393_v11  ;;  %vm1118_vm10 = vmpackc.low %vm47_vm7, %vm46_vm6  ;;  %v1507_v33 = vpack.c.bf16 %v1485_v29, %v1480_v28  ;;  %v1521_v35 = vld [vmem:[%s2281_s2 + $0x78] sm:$0xff]  ;;  %v1528_v37 = vadd.s32 72, %v1391_v10 }
   0xe   :  { %1198 = vmatprep.subr.msk.bf16.mxu1 %vm1118_vm10, %v1328_v16  ;;  %vm1500_vm11 = vmpackc.low %vm49_vm9, %vm48_vm8  ;;  %vm50_vm12 = vcmp.le.s32.totalorder %v1493_v30, %v1393_v11  ;;  %vm51_vm13 = vcmp.le.s32.totalorder %v1496_v31, %v1393_v11  ;;  %2288 = vst [vmem:[#allocation11_spill] sm:$0xff] %v1521_v35  ;;  %v1541_v39 = vpack.c.bf16 %v1521_v35, %v1516_v34  ;;  %v1551_v40 = vadd.s32 80, %v1391_v10 }
   0xf   :  { %1169 = vmatpush3.bf16.msra.mxu0 %v1403_v13  ;;  %vm1534_vm14 = vmpackc.low %vm51_vm13, %vm50_vm12  ;;  %vm52_vm15 = vcmp.le.s32.totalorder %v1525_v36, %v1393_v11  ;;  %vm53_vm0 = vcmp.le.s32.totalorder %v1528_v37, %v1393_v11  ;;  %v1554_v41 = vadd.s32 88, %v1391_v10  ;;  %vm110_vm1 = vcmp.lt.s32.totalorder %v1393_v11, %v1451_v23 }
  0x10   :  { %1170 = vmatprep.subr.bf16.mxu0 %v1422_v17  ;;  %vm111_vm2 = vcmp.lt.s32.totalorder %v1393_v11, %v1454_v24  ;;  %vm1564_vm3 = vmpackc.low %vm53_vm0, %vm52_vm15  ;;  %vm54_vm4 = vcmp.le.s32.totalorder %v1551_v40, %v1393_v11  ;;  %vm112_vm6 = vcmp.lt.s32.totalorder %v1393_v11, %v1462_v25  ;;  %vm113_vm7 = vcmp.lt.s32.totalorder %v1393_v11, %v1465_v26 }
  0x11   :  { %1199 = vmatpush3.bf16.msk.msra.mxu1 %vm1118_vm10, %v1328_v16  ;;  %vm55_vm5 = vcmp.le.s32.totalorder %v1554_v41, %v1393_v11  ;;  %vm1102_vm8 = vmpackc.low %vm111_vm2, %vm110_vm1  ;;  %v1581_v43 = vadd.s32 96, %v1391_v10  ;;  %v1584_v44 = vadd.s32 104, %v1391_v10  ;;  %v1603_v46 = vadd.s32 112, %v1391_v10 }
  0x12   :  { %1200 = vmatprep.subr.msk.bf16.mxu1 %vm1500_vm11, %v1328_v16  ;;  %vm1590_vm9 = vmpackc.low %vm55_vm5, %vm54_vm4  ;;  %v1606_v47 = vadd.s32 120, %v1391_v10  ;;  %vm114_vm13 = vcmp.lt.s32.totalorder %v1393_v11, %v1493_v30  ;;  %vm116_vm2 = vcmp.lt.s32.totalorder %v1393_v11, %v1525_v36  ;;  %v1329_v48 = vmov 0  }
  0x13   :  { %1171 = vmatpush3.bf16.msra.mxu0 %v1422_v17  ;;  %vm1104_vm10 = vmpackc.low %vm113_vm7, %vm112_vm6  ;;  %vm57_vm12 = vcmp.le.s32.totalorder %v1584_v44, %v1393_v11  ;;  %vm58_vm0 = vcmp.le.s32.totalorder %v1603_v46, %v1393_v11  ;;  %vm118_vm7 = vcmp.lt.s32.totalorder %v1393_v11, %v1551_v40  ;;  %1233 = vset.pattern.permute.xlu1 %v1329_v48  ;;  %v1330_v49 = vmov 0.0  }
  0x14   :  { %1172 = vmatprep.subr.bf16.mxu0 %v1438_v20  ;;  %vm59_vm1 = vcmp.le.s32.totalorder %v1606_v47, %v1393_v11  ;;  %1232 = vset.pattern.permute.xlu0 %v1329_v48 }
  0x15   :  { %1201 = vmatpush3.bf16.msk.msra.mxu1 %vm1500_vm11, %v1328_v16  ;;  %vm56_vm11 = vcmp.le.s32.totalorder %v1581_v43, %v1393_v11  ;;  %vm1130_vm5 = vmpackc.low %vm59_vm1, %vm58_vm0  ;;  %vm22_vm0 = vcmask 0  }
  0x16   :  { %1202 = vmatprep.subr.msk.bf16.mxu1 %vm1534_vm14, %v1328_v16  ;;  %vm1128_vm15 = vmpackc.low %vm57_vm12, %vm56_vm11  ;;  %24 = vst.msk [vmem:[#allocation2] sm:$0x1] %vm22_vm0, %v1330_v49 }
  0x17   :  { %1173 = vmatpush3.bf16.msra.mxu0 %v1438_v20  ;;  %23 = vst.msk [vmem:[#allocation7] sm:$0x1] %vm22_vm0, %v1330_v49 }
  0x18   :  { %1174 = vmatprep.subr.bf16.mxu0 %v1474_v27 }
  0x19   :  { %1203 = vmatpush3.bf16.msk.msra.mxu1 %vm1534_vm14, %v1328_v16  ;;  %vm115_vm14 = vcmp.lt.s32.totalorder %v1393_v11, %v1496_v31 }
  0x1a   :  { %1204 = vmatprep.subr.msk.bf16.mxu1 %vm1564_vm3, %v1328_v16  ;;  %vm1106_vm4 = vmpackc.low %vm115_vm14, %vm114_vm13  ;;  %vm122_vm13 = vcmp.lt.s32.totalorder %v1393_v11, %v1603_v46  ;;  %vm123_vm14 = vcmp.lt.s32.totalorder %v1393_v11, %v1606_v47 }
  0x1b   :  { %1175 = vmatpush3.bf16.msra.mxu0 %v1474_v27 }
  0x1c   :  { %1176 = vmatprep.subr.bf16.mxu0 %v1507_v33 }
  0x1d   :  { %1205 = vmatpush3.bf16.msk.msra.mxu1 %vm1564_vm3, %v1328_v16  ;;  %vm117_vm3 = vcmp.lt.s32.totalorder %v1393_v11, %v1528_v37 }
  0x1e   :  { %1206 = vmatprep.subr.msk.bf16.mxu1 %vm1590_vm9, %v1328_v16  ;;  %vm1108_vm6 = vmpackc.low %vm117_vm3, %vm116_vm2 }
  0x1f   :  { %1177 = vmatpush3.bf16.msra.mxu0 %v1507_v33 }
  0x20   :  { %1178 = vmatprep.subr.bf16.mxu0 %v1541_v39 }
  0x21   :  { %1207 = vmatpush3.bf16.msk.msra.mxu1 %vm1590_vm9, %v1328_v16  ;;  %vm120_vm9 = vcmp.lt.s32.totalorder %v1393_v11, %v1581_v43 }
  0x22   :  { %1208 = vmatprep.subr.msk.bf16.mxu1 %vm1128_vm15, %v1328_v16 }
  0x23   :  { %1179 = vmatpush3.bf16.msra.mxu0 %v1541_v39 }
  0x25   :  { %1209 = vmatpush3.bf16.msk.msra.mxu1 %vm1128_vm15, %v1328_v16  ;;  %vm1114_vm15 = vmpackc.low %vm123_vm14, %vm122_vm13 }
  0x26   :  { %1181 = vmatmul.mubr.msk.bf16.vlgmr.msra.gmra.mrb[0].mxu0 %vm1102_vm8, %v1328_v16  ;;  %1210 = vmatprep.subr.msk.bf16.mxu1 %vm1130_vm5, %v1328_v16  ;;  %vm119_vm8 = vcmp.lt.s32.totalorder %v1393_v11, %v1554_v41 }
  0x27   :  { %1184 = vmatprep.mubr.msk.bf16.mxu0 %vm1104_vm10, %v1328_v16  ;;  %vm121_vm10 = vcmp.lt.s32.totalorder %v1393_v11, %v1584_v44  ;;  %vm1110_vm11 = vmpackc.low %vm119_vm8, %vm118_vm7 }
  0x28   :  { %vm1112_vm12 = vmpackc.low %vm121_vm10, %vm120_vm9 }
  0x29   :  { %1211 = vmatpush3.bf16.msk.msra.mxu1 %vm1130_vm5, %v1328_v16 }
  0x2c   :  { %1213 = vmatmul.mubr.bf16.vlgmr.msra.gmra.mrb[0].mxu1 %v1379_v7  ;;  %v1083_v7 = vld [vmem:[#allocation6] ss:$0 sm:$0xff] }
  0x2d   :  { %1216 = vmatprep.mubr.bf16.mxu1 %v1403_v13 }
  0x2e   :  { %1185 = vmatmul.mubr.msk.bf16.gmra.mrb[4].mxu0 %vm1106_vm4, %v1328_v16 }
  0x2f   :  { %1188 = vmatprep.mubr.msk.bf16.mxu0 %vm1108_vm6, %v1328_v16 }
  0x34   :  { %1217 = vmatmul.mubr.bf16.gmra.mrb[4].mxu1 %v1422_v17  ;;  %v1303_v17 = vld [vmem:[#allocation2] ss:$0 sm:$0xff] }
  0x35   :  { %1220 = vmatprep.mubr.bf16.mxu1 %v1438_v20 }
  0x36   :  { %1189 = vmatmul.mubr.msk.bf16.gmra.mrb[8].mxu0 %vm1110_vm11, %v1328_v16 }
  0x37   :  { %1192 = vmatprep.mubr.msk.bf16.mxu0 %vm1112_vm12, %v1328_v16 }
  0x3c   :  { %1221 = vmatmul.mubr.bf16.gmra.mrb[8].mxu1 %v1474_v27 }
  0x3d   :  { %1224 = vmatprep.mubr.bf16.mxu1 %v1507_v33 }
  0x3e   :  { %1193 = vmatmul.mubr.msk.bf16.gmra.mrb[12].mxu0 %vm1114_vm15, %v1328_v16 }
  0x44   :  { %1225 = vmatmul.mubr.bf16.gmra.mrb[12].mxu1 %v1541_v39 }
  0xf9   :  { %v1182_v50 = vpop.f32.mrb[0].mxu0 }
  0xfa   :  { %411 = vadd.xlane.f32.xlu1 %v1182_v50  ;;  %v344_v51 = vpop.f32.mrb[1].mxu0 }
  0xfb   :  { %407 = vadd.xlane.f32.xlu0 %v344_v51  ;;  %v1183_v52 = vpop.f32.mrb[2].mxu0 }
  0xfc   :  { %v347_v53 = vpop.f32.mrb[3].mxu0 }
  0xfe   :  { %413 = vadd.xlane.f32.xlu1 %v1183_v52 }
  0xff   :  { %409 = vadd.xlane.f32.xlu0 %v347_v53  ;;  %v1657_v58 = vpop.f32.mrb[0].mxu1  ;;  %v173_v53 = vmul.u32 128, %v1396_v12 }
 0x100   :  { %v1659_v59 = vpop.f32.mrb[1].mxu1 }
 0x101   :  { %v1186_v54 = vpop.f32.mrb[4].mxu0  ;;  %v1661_v63 = vpop.f32.mrb[2].mxu1 }
 0x102   :  { %419 = vadd.xlane.f32.xlu1 %v1186_v54  ;;  %v360_v55 = vpop.f32.mrb[5].mxu0  ;;  %v1663_v4 = vpop.f32.mrb[3].mxu1  ;;  %v174_v54 = vmul.u32 128, %v1451_v23 }
 0x103   :  { %415 = vadd.xlane.f32.xlu0 %v360_v55  ;;  %v1187_v56 = vpop.f32.mrb[6].mxu0  ;;  %v175_v55 = vmul.u32 128, %v1454_v24 }
 0x104   :  { %v363_v57 = vpop.f32.mrb[7].mxu0 }
 0x105   :  { %v191_v12 = vadd.s32 %v175_v55, %v1393_v11 }
 0x107   :  { %v1665_v5 = vpop.f32.mrb[4].mxu1 }
 0x108   :  { %v1667_v13 = vpop.f32.mrb[5].mxu1 }
 0x109   :  { %v1190_v60 = vpop.f32.mrb[8].mxu0  ;;  %v1669_v33 = vpop.f32.mrb[6].mxu1 }
 0x10a   :  { %v376_v61 = vpop.f32.mrb[9].mxu0  ;;  %v1671_v38 = vpop.f32.mrb[7].mxu1 }
 0x10b   :  { %v1191_v62 = vpop.f32.mrb[10].mxu0 }
 0x10c   :  { %v379_v0 = vpop.f32.mrb[11].mxu0 }
 0x10f   :  { %v1674_v39 = vpop.f32.mrb[8].mxu1 }
 0x110   :  { %v1676_v42 = vpop.f32.mrb[9].mxu1 }
 0x111   :  { %v1194_v16 = vpop.f32.mrb[12].mxu0  ;;  %v1678_v45 = vpop.f32.mrb[10].mxu1 }
 0x112   :  { %v392_v20 = vpop.f32.mrb[13].mxu0  ;;  %2295 = vst [vmem:[#allocation12_spill] sm:$0xff] %v1678_v45  ;;  %v1680_v48 = vpop.f32.mrb[11].mxu1 }
 0x113   :  { %602 = vperm.xlu1 %1233, %v1083_v7   ;;  %v1195_v27 = vpop.f32.mrb[14].mxu0  ;;  %2296 = vst [vmem:[#allocation13_spill] sm:$0xff] %v1680_v48  ;;  %v190_v7 = vadd.s32 %v174_v54, %v1393_v11 }
 0x114   :  { %v395_v32 = vpop.f32.mrb[15].mxu0 }
 0x117   :  { %v1682_v49 = vpop.f32.mrb[12].mxu1 }
 0x118   :  { %v1686_v50 = vpop.f32.mrb[13].mxu1 }
 0x119   :  { %542 = vperm.xlu0 %1232, %v1303_v17   ;;  %2297 = vst [vmem:[#allocation14_spill] sm:$0xff] %v1686_v50  ;;  %v1689_v51 = vpop.f32.mrb[14].mxu1 }
 0x11a   :  { %2298 = vst [vmem:[#allocation15_spill] sm:$0xff] %v1689_v51  ;;  %v1691_v52 = vpop.f32.mrb[15].mxu1 }
 0x11b   :  { %2299 = vst [vmem:[#allocation16_spill] sm:$0xff] %v1691_v52 }
 0x137   :  { %421 = vadd.xlane.f32.xlu1 %v1187_v56  ;;  %v172_v56 = vmul.u32 128, %v1391_v10 }
 0x138   :  { %423 = vadd.xlane.f32.xlu0 %v376_v61  ;;  %v176_v61 = vmul.u32 128, %v1462_v25 }
 0x13a   :  { %v192_v24 = vadd.s32 %v176_v61, %v1393_v11 }
 0x13b   :  { %417 = vadd.xlane.f32.xlu1 %v363_v57  ;;  %v178_v57 = vmul.u32 128, %v1493_v30  ;;  %v206_v30 = vadd.s32 1, %v190_v7 }
 0x13c   :  { %435 = vadd.xlane.f32.xlu0 %v1194_v16  ;;  %v188_v16 = vadd.s32 %v172_v56, %v1393_v11  ;;  %v1709_v52 = vadd.s32 1, %v192_v24 }
 0x13d   :  { %v194_v23 = vadd.s32 %v178_v57, %v1393_v11  ;;  %v222_v54 = vcvt.s32.f32 %v206_v30 }
 0x13f   :  { %427 = vadd.xlane.f32.xlu1 %v1190_v60  ;;  %v210_v51 = vadd.s32 1, %v194_v23 }
 0x140   :  { %978 = vadd.xlane.f32.xlu0 %v1358_v1 }
 0x141   :  { %v226_v61 = vcvt.s32.f32 %v210_v51 }
 0x143   :  { %429 = vadd.xlane.f32.xlu1 %v1191_v62  ;;  %v1090_v7 = vadd.f32 -1.0, %v226_v61 }
 0x147   :  { %425 = vadd.xlane.f32.xlu1 %v379_v0  ;;  %v189_v0 = vadd.s32 %v173_v53, %v1393_v11 }
 0x149   :  { %v205_v10 = vadd.s32 1, %v189_v0 }
 0x14b   :  { %431 = vadd.xlane.f32.xlu1 %v392_v20  ;;  %v221_v56 = vcvt.s32.f32 %v205_v10  ;;  %v1086_v10 = vadd.f32 -1.0, %v222_v54 }
 0x14f   :  { %433 = vadd.xlane.f32.xlu1 %v395_v32  ;;  %v207_v32 = vadd.s32 1, %v191_v12  ;;  %v224_v12 = vcvt.s32.f32 %v1709_v52 }
 0x151   :  { %v223_v55 = vcvt.s32.f32 %v207_v32  ;;  %v1088_v48 = vadd.f32 -1.0, %v224_v12 }
 0x153   :  { %437 = vadd.xlane.f32.xlu1 %v1195_v27  ;;  %v204_v27 = vadd.s32 1, %v188_v16  ;;  %v1087_v53 = vadd.f32 -1.0, %v223_v55 }
 0x155   :  { %v220_v50 = vcvt.s32.f32 %v204_v27  ;;  %v1085_v27 = vadd.f32 -1.0, %v221_v56 }
 0x157   :  { %980 = vadd.xlane.f32.xlu1 %v1363_v2  ;;  %v1084_v32 = vadd.f32 -1.0, %v220_v50 }
 0x15b   :  { %982 = vadd.xlane.f32.xlu1 %v1368_v3 }
 0x15f   :  { %984 = vadd.xlane.f32.xlu1 %v1375_v6 }
 0x163   :  { %986 = vadd.xlane.f32.xlu1 %v1384_v8 }
 0x167   :  { %988 = vadd.xlane.f32.xlu1 %v1389_v9 }
 0x16b   :  { %990 = vadd.xlane.f32.xlu1 %v1408_v14 }
 0x16f   :  { %992 = vadd.xlane.f32.xlu1 %v1413_v15 }
 0x187   :  { %v412_v60 = vpop.xlane.xlu1 %411 }
 0x188   :  { %v408_v62 = vpop.xlane.xlu0 %407  ;;  %v482_v57 = vadd.f32 %v1657_v58, %v412_v60 }
 0x189   :  { %v474_v51 = vadd.f32 %v1659_v59, %v408_v62 }
 0x18b   :  { %v414_v17 = vpop.xlane.xlu1 %413 }
 0x18c   :  { %v410_v20 = vpop.xlane.xlu0 %409  ;;  %v485_v35 = vadd.f32 %v1661_v63, %v414_v17 }
 0x18d   :  { %v477_v0 = vadd.f32 %v1663_v4, %v410_v20 }
 0x18f   :  { %v420_v25 = vpop.xlane.xlu1 %419 }
 0x190   :  { %v416_v16 = vpop.xlane.xlu0 %415  ;;  %v498_v52 = vadd.f32 %v1665_v5, %v420_v25 }
 0x191   :  { %v490_v63 = vadd.f32 %v1667_v13, %v416_v16 }
 0x193   :  { %v1719_v30 = vpop.permute.xlu1 %602 }
 0x194   :  { %v607_v24 = vadd.f32 %v1719_v30, %v222_v54  ;;  %v606_v58 = vadd.f32 %v1719_v30, %v221_v56  ;;  %v735_v4 = vadd.f32 %v1086_v10, %v1719_v30  ;;  %v605_v5 = vadd.f32 %v1719_v30, %v220_v50 }
 0x195   :  { %v734_v25 = vadd.f32 %v1085_v27, %v1719_v30  ;;  %v733_v50 = vadd.f32 %v1084_v32, %v1719_v30 }
 0x198   :  { %v1726_v23 = vpop.permute.xlu0 %542 }
 0x199   :  { %v1730_v45 = vadd.f32 %v1726_v23, %v482_v57  ;;  %v1733_v29 = vadd.f32 %v1726_v23, %v477_v0  ;;  %v1737_v59 = vadd.f32 %v1726_v23, %v474_v51  ;;  %v1743_v60 = vadd.f32 %v1726_v23, %v485_v35 }
 0x19a   :  { %v608_v35 = vadd.f32 %v1719_v30, %v223_v55  ;;  %v736_v57 = vadd.f32 %v1087_v53, %v1719_v30  ;;  %v1772_v16 = vadd.f32 %v1726_v23, %v498_v52  ;;  %v609_v51 = vadd.f32 %v1719_v30, %v224_v12 }
 0x19b   :  { %v623_v62 = vsub.f32 %v607_v24, %v1730_v45  ;;  %v1748_v17 = vsub.f32 %v1730_v45, %v1368_v3  ;;  %v622_v20 = vsub.f32 %v606_v58, %v1733_v29  ;;  %v1754_v13 = vsub.f32 %v1733_v29, %v1363_v2 }
 0x19c   :  { %v621_v54 = vsub.f32 %v605_v5, %v1737_v59  ;;  %v1764_v3 = vsub.f32 %v1737_v59, %v1358_v1  ;;  %v624_v0 = vsub.f32 %v608_v35, %v1743_v60  ;;  %v611_v1 = vadd.f32 %v1719_v30, %v226_v61 }
 0x19d   :  { %1234 = vrcp.f32 %v623_v62  ;;  %v1760_v56 = vsub.f32 %v735_v4, %v1748_v17  ;;  %v1768_v2 = vsub.f32 %v734_v25, %v1754_v13  ;;  %v1784_v24 = vadd.f32 %v1726_v23, %v490_v63 }
 0x19e   :  { %1236 = vrcp.f32 %v622_v20  ;;  %v1776_v55 = vsub.f32 %v733_v50, %v1764_v3  ;;  %v1792_v61 = vsub.f32 %v1743_v60, %v1375_v6  ;;  %v627_v32 = vsub.f32 %v611_v1, %v1772_v16 }
 0x19f   :  { %vm767_vm1 = vcmp.gt.f32.partialorder %v1760_v56, 0.0  ;;  %1238 = vrcp.f32 %v621_v54  ;;  %vm766_vm2 = vcmp.gt.f32.partialorder %v1768_v2, 0.0  ;;  %v1804_v58 = vsub.f32 %v1772_v16, %v1408_v14 }
 0x1a0   :  { %v783_v53 = vsel %vm767_vm1, %v1760_v56, 1.0  ;;  %1240 = vrcp.f32 %v624_v0  ;;  %v782_v10 = vsel %vm766_vm2, %v1768_v2, 1.0  ;;  %vm765_vm3 = vcmp.gt.f32.partialorder %v1776_v55, 0.0 }
 0x1a1   :  { %1242 = vrcp.f32 %v783_v53  ;;  %v781_v27 = vsel %vm765_vm3, %v1776_v55, 1.0  ;;  %v1800_v52 = vsub.f32 %v736_v57, %v1792_v61  ;;  %v739_v6 = vadd.f32 %v1090_v7, %v1719_v30 }
 0x1a2   :  { %1244 = vrcp.f32 %v782_v10  ;;  %v625_v63 = vsub.f32 %v609_v51, %v1784_v24  ;;  %v1810_v4 = vsub.f32 %v1784_v24, %v1384_v8  ;;  %v737_v5 = vadd.f32 %v1088_v48, %v1719_v30 }
 0x1a3   :  { %1246 = vrcp.f32 %v781_v27  ;;  %v185_v12 = vmul.u32 128, %v1584_v44  ;;  %v186_v62 = vmul.u32 128, %v1603_v46  ;;  %vm768_vm4 = vcmp.gt.f32.partialorder %v1800_v52, 0.0 }
 0x1a4   :  { %1248 = vrcp.f32 %v627_v32  ;;  %v1817_v14 = vsub.f32 %v739_v6, %v1804_v58  ;;  %v639_v7 = vsub.f32 %v1719_v30, %v1730_v45  ;;  %v784_v20 = vsel %vm768_vm4, %v1800_v52, 1.0 }
 0x1a5   :  { %1250 = vrcp.f32 %v625_v63  ;;  %v1825_v8 = vsub.f32 %v737_v5, %v1810_v4  ;;  %v638_v46 = vsub.f32 %v1719_v30, %v1733_v29  ;;  %v2300_v35 = vmul.u32 128, %v1496_v31  ;;  %v270_v63 = vld [vmem:[%s2280_s1 + $0x10] sm:$0xff] }
 0x1a6   :  { %1252 = vrcp.f32 %v784_v20  ;;  %vm771_vm5 = vcmp.gt.f32.partialorder %v1817_v14, 0.0  ;;  %v640_v29 = vsub.f32 %v1719_v30, %v1743_v60  ;;  %v799_v27 = vsub.f32 %v1719_v30, %v1748_v17  ;;  %v269_v17 = vld [vmem:[%s2280_s1 + $0x8] sm:$0xff] }
 0x1a7   :  { %v1235_v48 = vpop.eup %1234  ;;  %v787_v45 = vsel %vm771_vm5, %v1817_v14, 1.0  ;;  %v195_v57 = vadd.s32 %v2300_v35, %v1393_v11  ;;  %vm769_vm6 = vcmp.gt.f32.partialorder %v1825_v8, 0.0  ;;  %v2301_v31 = vmul.u32 128, %v1525_v36 }
 0x1a8   :  { %v1237_v54 = vpop.eup %1236  ;;  %v658_v50 = vmul.f32 %v1235_v48, %v639_v7  ;;  %1254 = vrcp.f32 %v787_v45  ;;  %v785_v53 = vsel %vm769_vm6, %v1825_v8, 1.0  ;;  %v2302_v51 = vmul.u32 128, %v1465_v26 }
 0x1a9   :  { %v1239_v0 = vpop.eup %1238  ;;  %v656_v1 = vmul.f32 %v1237_v54, %v638_v46  ;;  %1256 = vrcp.f32 %v785_v53  ;;  %v1848_v32 = vadd.s32 %v2301_v31, %v1393_v11  ;;  %v798_v5 = vsub.f32 %v1719_v30, %v1754_v13 }
 0x1aa   :  { %v1241_v10 = vpop.eup %1240  ;;  %v1853_v6 = vadd.s32 %v2302_v51, %v1393_v11  ;;  %v637_v36 = vsub.f32 %v1719_v30, %v1737_v59  ;;  %v1866_v26 = vadd.s32 %v186_v62, %v1393_v11  ;;  %v797_v46 = vsub.f32 %v1719_v30, %v1764_v3 }
 0x1ab   :  { %v1243_v60 = vpop.eup %1242  ;;  %v660_v7 = vmul.f32 %v1241_v10, %v640_v29  ;;  %v1870_v54 = vadd.s32 1, %v195_v57  ;;  %v2303_v45 = vmul.u32 128, %v1551_v40  ;;  %v643_v59 = vsub.f32 %v1719_v30, %v1772_v16 }
 0x1ac   :  { %v1245_v20 = vpop.eup %1244  ;;  %v818_v48 = vmul.f32 %v1243_v60, %v799_v27  ;;  %v654_v31 = vmul.f32 %v1239_v0, %v637_v36  ;;  %v2304_v62 = vmul.u32 128, %v1554_v41  ;;  %v895_v3 = vmax.f32 %v270_v63, 0.0  ;;  %v268_v41 = vld [vmem:[%s2280_s1] sm:$0xff] }
 0x1ad   :  { %v1875_v35 = vadd.s32 %v2303_v45, %v1393_v11  ;;  %v1247_v13 = vpop.eup %1246  ;;  %v816_v53 = vmul.f32 %v1245_v20, %v798_v5  ;;  %v894_v57 = vmax.f32 %v269_v17, 0.0  ;;  %v687_v60 = vsub.f32 1.0, %v658_v50 }
 0x1ae   :  { %v199_v29 = vadd.s32 %v2304_v62, %v1393_v11  ;;  %v1249_v10 = vpop.eup %1248  ;;  %v847_v27 = vsub.f32 1.0, %v818_v48  ;;  %v814_v51 = vmul.f32 %v1247_v13, %v797_v46  ;;  %v641_v45 = vsub.f32 %v1719_v30, %v1784_v24 }
 0x1af   :  { %v846_v25 = vsub.f32 1.0, %v816_v53  ;;  %v666_v40 = vmul.f32 %v1249_v10, %v643_v59  ;;  %v1251_v5 = vpop.eup %1250  ;;  %v686_v16 = vsub.f32 1.0, %v656_v1  ;;  %v800_v63 = vsub.f32 %v1719_v30, %v1792_v61  ;;  %v271_v61 = vld [vmem:[%s2280_s1 + $0x18] sm:$0xff] }
 0x1b0   :  { %v863_v0 = vsel %vm767_vm1, %v847_v27, 0.0  ;;  %v845_v36 = vsub.f32 1.0, %v814_v51  ;;  %v1253_v17 = vpop.eup %1252  ;;  %v685_v48 = vsub.f32 1.0, %v654_v31  ;;  %v662_v24 = vmul.f32 %v1251_v5, %v641_v45 }
 0x1b1   :  { %v879_v50 = vsub.f32 %v687_v60, %v863_v0  ;;  %v862_v20 = vsel %vm766_vm2, %v846_v25, 0.0  ;;  %v820_v1 = vmul.f32 %v1253_v17, %v800_v63  ;;  %v803_v13 = vsub.f32 %v1719_v30, %v1804_v58 }
 0x1b2   :  { %v878_v46 = vsub.f32 %v686_v16, %v862_v20  ;;  %v861_v56 = vsel %vm765_vm3, %v845_v36, 0.0  ;;  %v1255_v53 = vpop.eup %1254  ;;  %v893_v10 = vmax.f32 %v268_v41, 0.0  ;;  %v801_v2 = vsub.f32 %v1719_v30, %v1810_v4 }
 0x1b3   :  { %v911_v59 = vmul.f32 %v895_v3, %v879_v50  ;;  %v877_v62 = vsub.f32 %v685_v48, %v861_v56  ;;  %v1257_v25 = vpop.eup %1256  ;;  %v848_v27 = vsub.f32 1.0, %v820_v1  ;;  %v826_v55 = vmul.f32 %v1255_v53, %v803_v13 }
 0x1b4   :  { %v910_v31 = vmul.f32 %v894_v57, %v878_v46  ;;  %v2305_v51 = vmul.u32 128, %v1528_v37  ;;  %v688_v58 = vsub.f32 1.0, %v660_v7  ;;  %v822_v3 = vmul.f32 %v1257_v25, %v801_v2 }
 0x1b5   :  { %929 = vadd.xlane.f32.xlu0 %v911_v59  ;;  %v2306_v45 = vmul.u32 128, %v1581_v43  ;;  %v201_v0 = vadd.s32 %v185_v12, %v1393_v11  ;;  %v864_v4 = vsel %vm768_vm4, %v848_v27, 0.0  ;;  %v896_v57 = vmax.f32 %v271_v61, 0.0  ;;  %v274_v43 = vld [vmem:[%s2280_s1 + $0x30] sm:$0xff]  ;;  %v1936_v27 = vld [vmem:[%s2280_s1 + $0x38] sm:$0xff] }
 0x1b6   :  { %v197_v60 = vadd.s32 %v2305_v51, %v1393_v11  ;;  %927 = vadd.xlane.f32.xlu1 %v910_v31  ;;  %v851_v16 = vsub.f32 1.0, %v826_v55  ;;  %v2307_v37 = vmul.u32 128, %v1606_v47  ;;  %v909_v7 = vmul.f32 %v893_v10, %v877_v62  ;;  %v1941_v55 = vld [vmem:[%s2280_s1 + $0x28] sm:$0xff]  ;;  %v1946_v51 = vld [vmem:[%s2280_s1 + $0x50] sm:$0xff] }
 0x1b7   :  { %v200_v5 = vadd.s32 %v2306_v45, %v1393_v11  ;;  %v880_v36 = vsub.f32 %v688_v58, %v864_v4  ;;  %v691_v63 = vsub.f32 1.0, %v666_v40  ;;  %v849_v17 = vsub.f32 1.0, %v822_v3 }
 0x1b8   :  { %v203_v41 = vadd.s32 %v2307_v37, %v1393_v11  ;;  %v867_v44 = vsel %vm771_vm5, %v851_v16, 0.0  ;;  %v689_v12 = vsub.f32 1.0, %v662_v24  ;;  %v212_v52 = vadd.s32 1, %v1848_v32 }
 0x1b9   :  { %v209_v50 = vadd.s32 1, %v1853_v6  ;;  %925 = vadd.xlane.f32.xlu0 %v909_v7  ;;  %v883_v20 = vsub.f32 %v691_v63, %v867_v44  ;;  %v865_v11 = vsel %vm769_vm6, %v849_v17, 0.0  ;;  %v218_v47 = vadd.s32 1, %v1866_v26  ;;  %v272_v6 = vld [vmem:[%s2280_s1 + $0x20] sm:$0xff] }
 0x1ba   :  { %v214_v40 = vadd.s32 1, %v1875_v35  ;;  %994 = vadd.xlane.f32.xlu1 %v1427_v18  ;;  %v881_v48 = vsub.f32 %v689_v12, %v865_v11  ;;  %v215_v46 = vadd.s32 1, %v199_v29  ;;  %v213_v14 = vadd.s32 1, %v197_v60 }
 0x1bb   :  { %v216_v56 = vadd.s32 1, %v200_v5  ;;  %v912_v24 = vmul.f32 %v896_v57, %v880_v36  ;;  %v899_v1 = vmax.f32 %v274_v43, 0.0  ;;  %v217_v32 = vadd.s32 1, %v201_v0 }
 0x1bc   :  { %v219_v13 = vadd.s32 1, %v203_v41  ;;  %v227_v8 = vcvt.s32.f32 %v1870_v54  ;;  %v228_v26 = vcvt.s32.f32 %v212_v52  ;;  %v225_v53 = vcvt.s32.f32 %v209_v50 }
 0x1bd   :  { %931 = vadd.xlane.f32.xlu0 %v912_v24  ;;  %v230_v35 = vcvt.s32.f32 %v214_v40  ;;  %v234_v59 = vcvt.s32.f32 %v218_v47  ;;  %v231_v29 = vcvt.s32.f32 %v215_v46  ;;  %v229_v62 = vcvt.s32.f32 %v213_v14 }
 0x1be   :  { %996 = vadd.xlane.f32.xlu1 %v1432_v19  ;;  %v232_v10 = vcvt.s32.f32 %v216_v56  ;;  %v915_v61 = vmul.f32 %v899_v1, %v883_v20  ;;  %v897_v2 = vmax.f32 %v272_v6, 0.0  ;;  %v233_v25 = vcvt.s32.f32 %v217_v32 }
 0x1bf   :  { %v235_v31 = vcvt.s32.f32 %v219_v13  ;;  %v1091_v54 = vadd.f32 -1.0, %v227_v8  ;;  %v1089_v19 = vadd.f32 -1.0, %v225_v53  ;;  %v1094_v60 = vadd.f32 -1.0, %v230_v35 }
 0x1c0   :  { %v1092_v58 = vadd.f32 -1.0, %v228_v26  ;;  %v1095_v3 = vadd.f32 -1.0, %v231_v29  ;;  %v1093_v45 = vadd.f32 -1.0, %v229_v62  ;;  %v1098_v5 = vadd.f32 -1.0, %v234_v59 }
 0x1c1   :  { %937 = vadd.xlane.f32.xlu0 %v915_v61  ;;  %v1096_v0 = vadd.f32 -1.0, %v232_v10  ;;  %v913_v4 = vmul.f32 %v897_v2, %v881_v48  ;;  %v900_v57 = vmax.f32 %v1936_v27, 0.0  ;;  %v1097_v16 = vadd.f32 -1.0, %v233_v25 }
 0x1c2   :  { %998 = vadd.xlane.f32.xlu1 %v1443_v21  ;;  %v1099_v37 = vadd.f32 -1.0, %v235_v31  ;;  %v612_v41 = vadd.f32 %v1719_v30, %v227_v8  ;;  %v613_v36 = vadd.f32 %v1719_v30, %v228_v26  ;;  %v898_v63 = vmax.f32 %v1941_v55, 0.0 }
 0x1c3   :  { %v903_v17 = vmax.f32 %v1946_v51, 0.0  ;;  %v610_v12 = vadd.f32 %v1719_v30, %v225_v53  ;;  %v619_v52 = vadd.f32 %v1719_v30, %v234_v59  ;;  %v615_v50 = vadd.f32 %v1719_v30, %v230_v35 }
 0x1c4   :  { %v422_v7 = vpop.xlane.xlu1 %421  ;;  %v1960_v11 = vadd.f32 %v1719_v30, %v231_v29  ;;  %v1964_v47 = vadd.f32 %v1719_v30, %v229_v62  ;;  %v1973_v48 = vadd.f32 %v1719_v30, %v233_v25  ;;  %v1976_v46 = vadd.f32 %v1719_v30, %v235_v31 }
 0x1c5   :  { %v501_v43 = vadd.f32 %v1669_v33, %v422_v7  ;;  %933 = vadd.xlane.f32.xlu0 %v913_v4  ;;  %v424_v44 = vpop.xlane.xlu0 %423  ;;  %v1967_v33 = vadd.f32 %v1719_v30, %v232_v10  ;;  %v738_v24 = vadd.f32 %v1089_v19, %v1719_v30  ;;  %v743_v1 = vadd.f32 %v1094_v60, %v1719_v30  ;;  %v2309_v7 = vld [vmem:[#allocation12_spill] sm:$0xff] }
 0x1c6   :  { %v506_v20 = vadd.f32 %v1676_v42, %v424_v44  ;;  %1000 = vadd.xlane.f32.xlu1 %v1448_v22  ;;  %v740_v42 = vadd.f32 %v1091_v54, %v1719_v30  ;;  %v741_v32 = vadd.f32 %v1092_v58, %v1719_v30  ;;  %v1992_v53 = vadd.f32 %v1095_v3, %v1719_v30  ;;  %v2308_v58 = vld [vmem:[#allocation10_spill] sm:$0xff] }
 0x1c7   :  { %v1970_v40 = vadd.f32 %v1726_v23, %v501_v43  ;;  %v2002_v62 = vadd.f32 %v1093_v45, %v1719_v30  ;;  %v747_v10 = vadd.f32 %v1098_v5, %v1719_v30  ;;  %v2027_v54 = vadd.f32 %v1097_v16, %v1719_v30 }
 0x1c8   :  { %v1980_v14 = vadd.f32 %v1726_v23, %v506_v20  ;;  %v418_v56 = vpop.xlane.xlu1 %417  ;;  %v2037_v3 = vadd.f32 %v1099_v37, %v1719_v30 }
 0x1c9   :  { %v628_v13 = vsub.f32 %v612_v41, %v1970_v40  ;;  %v1988_v6 = vsub.f32 %v1970_v40, %v1413_v15  ;;  %v493_v8 = vadd.f32 %v1671_v38, %v418_v56  ;;  %v436_v26 = vpop.xlane.xlu0 %435  ;;  %v644_v5 = vsub.f32 %v1719_v30, %v1970_v40 }
 0x1ca   :  { %v629_v35 = vsub.f32 %v613_v36, %v1980_v14  ;;  %v1997_v59 = vsub.f32 %v1980_v14, %v1427_v18  ;;  %v530_v29 = vadd.f32 %v1682_v49, %v436_v26  ;;  %1002 = vadd.xlane.f32.xlu1 %v1480_v28  ;;  %v2018_v28 = vadd.f32 %v1096_v0, %v1719_v30 }
 0x1cb   :  { %1258 = vrcp.f32 %v628_v13  ;;  %v2005_v15 = vadd.f32 %v1726_v23, %v493_v8  ;;  %v2008_v38 = vsub.f32 %v740_v42, %v1988_v6  ;;  %v645_v16 = vsub.f32 %v1719_v30, %v1980_v14  ;;  %v2311_v13 = vld [vmem:[#allocation11_spill] sm:$0xff] }
 0x1cc   :  { %1260 = vrcp.f32 %v629_v35  ;;  %v2012_v18 = vadd.f32 %v1726_v23, %v530_v29  ;;  %v428_v61 = vpop.xlane.xlu1 %427  ;;  %v2015_v49 = vsub.f32 %v741_v32, %v1997_v59  ;;  %v805_v20 = vsub.f32 %v1719_v30, %v1997_v59  ;;  %v1300_v59 = vld [vmem:[%s2281_s2 + $0x68] sm:$0xff] }
 0x1cd   :  { %v626_v2 = vsub.f32 %v610_v12, %v2005_v15  ;;  %v2023_v25 = vsub.f32 %v2005_v15, %v1389_v9  ;;  %v514_v31 = vadd.f32 %v1674_v39, %v428_v61  ;;  %vm772_vm7 = vcmp.gt.f32.partialorder %v2008_v38, 0.0 }
 0x1ce   :  { %v635_v19 = vsub.f32 %v619_v52, %v2012_v18  ;;  %v2032_v60 = vsub.f32 %v2012_v18, %v1516_v34  ;;  %1004 = vadd.xlane.f32.xlu1 %v2308_v58  ;;  %v788_v39 = vsel %vm772_vm7, %v2008_v38, 1.0  ;;  %vm773_vm8 = vcmp.gt.f32.partialorder %v2015_v49, 0.0 }
 0x1cf   :  { %1262 = vrcp.f32 %v626_v2  ;;  %v2040_v9 = vadd.f32 %v1726_v23, %v514_v31  ;;  %v2046_v45 = vsub.f32 %v738_v24, %v2023_v25  ;;  %v789_v43 = vsel %vm773_vm8, %v2015_v49, 1.0  ;;  %v2310_v24 = vld [vmem:[#allocation13_spill] sm:$0xff]  ;;  %v1298_v2 = vld [vmem:[%s2281_s2 + $0x48] sm:$0xff] }
 0x1d0   :  { %1264 = vrcp.f32 %v635_v19  ;;  %v430_v0 = vpop.xlane.xlu1 %429  ;;  %v2052_v4 = vsub.f32 %v747_v10, %v2032_v60  ;;  %v651_v42 = vsub.f32 %v1719_v30, %v2012_v18  ;;  %v2312_v19 = vld [vmem:[#allocation14_spill] sm:$0xff] }
 0x1d1   :  { %v631_v37 = vsub.f32 %v615_v50, %v2040_v9  ;;  %v2059_v41 = vsub.f32 %v2040_v9, %v1443_v21  ;;  %v517_v36 = vadd.f32 %v2309_v7, %v430_v0  ;;  %1266 = vrcp.f32 %v788_v39 }
 0x1d2   :  { %1006 = vadd.xlane.f32.xlu1 %v1516_v34  ;;  %vm770_vm9 = vcmp.gt.f32.partialorder %v2046_v45, 0.0  ;;  %vm779_vm10 = vcmp.gt.f32.partialorder %v2052_v4, 0.0  ;;  %v642_v34 = vsub.f32 %v1719_v30, %v2005_v15  ;;  %v804_v50 = vsub.f32 %v1719_v30, %v1988_v6 }
 0x1d3   :  { %1268 = vrcp.f32 %v631_v37  ;;  %v2069_v44 = vadd.f32 %v1726_v23, %v517_v36  ;;  %v786_v21 = vsel %vm770_vm9, %v2046_v45, 1.0  ;;  %v2075_v12 = vsub.f32 %v743_v1, %v2059_v41 }
 0x1d4   :  { %v426_v52 = vpop.xlane.xlu1 %425  ;;  %1270 = vrcp.f32 %v786_v21  ;;  %v795_v8 = vsel %vm779_vm10, %v2052_v4, 1.0  ;;  %v647_v35 = vsub.f32 %v1719_v30, %v2040_v9  ;;  %v802_v15 = vsub.f32 %v1719_v30, %v2023_v25 }
 0x1d5   :  { %v1259_v40 = vpop.eup %1258  ;;  %v632_v14 = vsub.f32 %v1960_v11, %v2069_v44  ;;  %v2089_v56 = vsub.f32 %v2069_v44, %v1448_v22  ;;  %v509_v1 = vadd.f32 %v2310_v24, %v426_v52  ;;  %vm775_vm11 = vcmp.gt.f32.partialorder %v2075_v12, 0.0  ;;  %v2313_v52 = vld [vmem:[#allocation16_spill] sm:$0xff] }
 0x1d6   :  { %v1261_v32 = vpop.eup %1260  ;;  %1008 = vadd.xlane.f32.xlu1 %v2311_v13  ;;  %v2093_v6 = vmul.f32 %v1259_v40, %v644_v5  ;;  %1272 = vrcp.f32 %v789_v43  ;;  %v791_v22 = vsel %vm775_vm11, %v2075_v12, 1.0  ;;  %v807_v25 = vsub.f32 %v1719_v30, %v2059_v41  ;;  %v276_v12 = vld [vmem:[%s2280_s1 + $0x40] sm:$0xff] }
 0x1d7   :  { %1274 = vrcp.f32 %v632_v14  ;;  %v2100_v11 = vadd.f32 %v1726_v23, %v509_v1  ;;  %v2105_v26 = vmul.f32 %v1261_v32, %v645_v16  ;;  %v2113_v10 = vsub.f32 %v1992_v53, %v2089_v56 }
 0x1d8   :  { %v432_v29 = vpop.xlane.xlu1 %431  ;;  %1276 = vrcp.f32 %v791_v22  ;;  %v811_v53 = vsub.f32 %v1719_v30, %v2032_v60  ;;  %v648_v37 = vsub.f32 %v1719_v30, %v2069_v44  ;;  %v692_v7 = vsub.f32 1.0, %v2093_v6 }
 0x1d9   :  { %v1263_v18 = vpop.eup %1262  ;;  %v630_v61 = vsub.f32 %v1964_v47, %v2100_v11  ;;  %v2121_v31 = vsub.f32 %v2100_v11, %v1298_v2  ;;  %v522_v58 = vadd.f32 %v2312_v19, %v432_v29  ;;  %vm776_vm12 = vcmp.gt.f32.partialorder %v2113_v10, 0.0  ;;  %v2314_v29 = vld [vmem:[#allocation15_spill] sm:$0xff] }
 0x1da   :  { %v1265_v9 = vpop.eup %1264  ;;  %v664_v39 = vmul.f32 %v1263_v18, %v642_v34  ;;  %1278 = vrcp.f32 %v795_v8  ;;  %v792_v5 = vsel %vm776_vm12, %v2113_v10, 1.0  ;;  %v1299_v34 = vld [vmem:[%s2281_s2 + $0x60] sm:$0xff]  ;;  %v808_v44 = vsub.f32 %v1719_v30, %v2089_v56 }
 0x1db   :  { %1280 = vrcp.f32 %v630_v61  ;;  %v2130_v47 = vadd.f32 %v1726_v23, %v522_v58  ;;  %v2137_v0 = vsub.f32 %v2002_v62, %v2121_v31  ;;  %v1267_v16 = vpop.eup %1266  ;;  %v2142_v36 = vmul.f32 %v1265_v9, %v651_v42 }
 0x1dc   :  { %v434_v41 = vpop.xlane.xlu1 %433  ;;  %1282 = vrcp.f32 %v792_v5  ;;  %v646_v42 = vsub.f32 %v1719_v30, %v2100_v11  ;;  %v828_v24 = vmul.f32 %v1267_v16, %v804_v50  ;;  %v693_v22 = vsub.f32 1.0, %v2105_v26 }
 0x1dd   :  { %v1269_v43 = vpop.eup %1268  ;;  %v633_v21 = vsub.f32 %v1967_v33, %v2130_v47  ;;  %v2150_v62 = vsub.f32 %v2130_v47, %v1299_v34  ;;  %v525_v40 = vadd.f32 %v2313_v52, %v434_v41  ;;  %vm774_vm13 = vcmp.gt.f32.partialorder %v2137_v0, 0.0 }
 0x1de   :  { %v1271_v14 = vpop.eup %1270  ;;  %v674_v1 = vmul.f32 %v1269_v43, %v647_v35  ;;  %v790_v13 = vsel %vm774_vm13, %v2137_v0, 1.0  ;;  %v852_v56 = vsub.f32 1.0, %v828_v24  ;;  %v690_v18 = vsub.f32 1.0, %v664_v39 }
 0x1df   :  { %1284 = vrcp.f32 %v633_v21  ;;  %v2159_v33 = vadd.f32 %v1726_v23, %v525_v40  ;;  %v824_v32 = vmul.f32 %v1271_v14, %v802_v15  ;;  %v2167_v50 = vsub.f32 %v2018_v28, %v2150_v62 }
 0x1e0   :  { %v1273_v6 = vpop.eup %1272  ;;  %v438_v8 = vpop.xlane.xlu1 %437  ;;  %1286 = vrcp.f32 %v790_v13  ;;  %v806_v61 = vsub.f32 %v1719_v30, %v2121_v31  ;;  %v868_v19 = vsel %vm772_vm7, %v852_v56, 0.0  ;;  %v649_v31 = vsub.f32 %v1719_v30, %v2130_v47 }
 0x1e1   :  { %v1275_v11 = vpop.eup %1274  ;;  %v634_v35 = vsub.f32 %v1973_v48, %v2159_v33  ;;  %v533_v15 = vadd.f32 %v2314_v29, %v438_v8  ;;  %v850_v26 = vsub.f32 1.0, %v824_v32  ;;  %v830_v28 = vmul.f32 %v1273_v6, %v805_v20 }
 0x1e2   :  { %v1277_v2 = vpop.eup %1276  ;;  %v676_v58 = vmul.f32 %v1275_v11, %v648_v37  ;;  %v884_v48 = vsub.f32 %v692_v7, %v868_v19  ;;  %v695_v16 = vsub.f32 1.0, %v674_v1  ;;  %v2190_v20 = vsub.f32 %v2159_v33, %v1300_v59 }
 0x1e3   :  { %1288 = vrcp.f32 %v634_v35  ;;  %v2180_v9 = vadd.f32 %v1726_v23, %v533_v15  ;;  %v834_v5 = vmul.f32 %v1277_v2, %v807_v25  ;;  %v866_v38 = vsel %vm770_vm9, %v850_v26, 0.0 }
 0x1e4   :  { %v1279_v39 = vpop.eup %1278  ;;  %v853_v41 = vsub.f32 1.0, %v830_v28  ;;  %v916_v25 = vmul.f32 %v900_v57, %v884_v48  ;;  %vm777_vm14 = vcmp.gt.f32.partialorder %v2167_v50, 0.0  ;;  %v882_v47 = vsub.f32 %v690_v18, %v866_v38  ;;  %v277_v28 = vld [vmem:[%s2280_s1 + $0x48] sm:$0xff] }
 0x1e5   :  { %v1281_v43 = vpop.eup %1280  ;;  %v636_v23 = vsub.f32 %v1976_v46, %v2180_v9  ;;  %v855_v37 = vsub.f32 1.0, %v834_v5  ;;  %v842_v46 = vmul.f32 %v1279_v39, %v811_v53  ;;  %v699_v40 = vsub.f32 1.0, %v2142_v36 }
 0x1e6   :  { %v1283_v45 = vpop.eup %1282  ;;  %v869_v7 = vsel %vm773_vm8, %v853_v41, 0.0  ;;  %v672_v21 = vmul.f32 %v1281_v43, %v646_v42  ;;  %939 = vadd.xlane.f32.xlu0 %v916_v25  ;;  %v914_v27 = vmul.f32 %v898_v63, %v882_v47  ;;  %v793_v49 = vsel %vm777_vm14, %v2167_v50, 1.0  ;;  %v281_v50 = vld [vmem:[%s2280_s1 + $0x68] sm:$0xff] }
 0x1e7   :  { %1290 = vrcp.f32 %v636_v23  ;;  %v885_v34 = vsub.f32 %v693_v22, %v869_v7  ;;  %v836_v52 = vmul.f32 %v1283_v45, %v808_v44  ;;  %v871_v57 = vsel %vm775_vm11, %v855_v37, 0.0  ;;  %v1301_v44 = vld [vmem:[%s2281_s2 + $0x78] sm:$0xff]  ;;  %v280_v45 = vld [vmem:[%s2280_s1 + $0x60] sm:$0xff] }
 0x1e8   :  { %v2214_v60 = vsub.f32 %v2180_v9, %v1301_v44  ;;  %v887_v53 = vsub.f32 %v695_v16, %v871_v57  ;;  %v859_v63 = vsub.f32 1.0, %v842_v46  ;;  %v696_v36 = vsub.f32 1.0, %v676_v58 }
 0x1e9   :  { %v1285_v14 = vpop.eup %1284  ;;  %v856_v55 = vsub.f32 1.0, %v836_v52  ;;  %1292 = vrcp.f32 %v793_v49  ;;  %v762_v1 = vsub.f32 %v2027_v54, %v2190_v20  ;;  %v650_v56 = vsub.f32 %v1719_v30, %v2159_v33 }
 0x1ea   :  { %v1287_v42 = vpop.eup %1286  ;;  %v678_v24 = vmul.f32 %v1285_v14, %v649_v31  ;;  %935 = vadd.xlane.f32.xlu0 %v914_v27  ;;  %v919_v32 = vmul.f32 %v903_v17, %v887_v53  ;;  %v875_v8 = vsel %vm779_vm10, %v859_v63, 0.0  ;;  %v901_v29 = vmax.f32 %v276_v12, 0.0  ;;  %v279_v17 = vld [vmem:[%s2280_s1 + $0x58] sm:$0xff]  ;;  %v282_v31 = vld [vmem:[%s2280_s1 + $0x70] sm:$0xff]  ;;  %v981_v12 = vpop.xlane.xlu1 %980 }
 0x1eb   :  { %v872_v13 = vsel %vm776_vm12, %v856_v55, 0.0  ;;  %v832_v6 = vmul.f32 %v1287_v42, %v806_v61  ;;  %v891_v11 = vsub.f32 %v699_v40, %v875_v8  ;;  %vm778_vm15 = vcmp.gt.f32.partialorder %v762_v1, 0.0  ;;  %v283_v53 = vld [vmem:[%s2280_s1 + $0x78] sm:$0xff]  ;;  %s1331_s1 = smov [#allocation7]  }
 0x1ec   :  { %v888_v22 = vsub.f32 %v696_v36, %v872_v13  ;;  %v794_v15 = vsel %vm778_vm15, %v762_v1, 1.0  ;;  %v764_v51 = vsub.f32 %v2037_v3, %v2214_v60  ;;  %v694_v4 = vsub.f32 1.0, %v672_v21  ;;  %s1043_s28 = sshll.u32 %s1331_s1, 4  ;;  %s1044_s28 = int_to_ptr.vmem [resolvable:$true] %s1043_s28 }
 0x1ed   :  { %v1289_v35 = vpop.eup %1288  ;;  %v854_v54 = vsub.f32 1.0, %v832_v6  ;;  %1294 = vrcp.f32 %v794_v15  ;;  %v652_v18 = vsub.f32 %v1719_v30, %v2180_v9  ;;  %v917_v3 = vmul.f32 %v901_v29, %v885_v34  ;;  %s1304_s29 = scalar_lea.vmem %s1044_s28, 16  ;;  %s1308_s30 = scalar_lea.vmem %s1044_s28, 32 }
 0x1ee   :  { %v680_v10 = vmul.f32 %v1289_v35, %v650_v56  ;;  %945 = vadd.xlane.f32.xlu0 %v919_v32  ;;  %vm780_vm1 = vcmp.gt.f32.partialorder %v764_v51, 0.0  ;;  %v904_v26 = vmax.f32 %v279_v17, 0.0  ;;  %v809_v0 = vsub.f32 %v1719_v30, %v2150_v62  ;;  %v983_v36 = vpop.xlane.xlu1 %982  ;;  %v979_v32 = vpop.xlane.xlu0 %978  ;;  %p1305_p0 = scmp.ne.s32.totalorder %s1044_s28, %s1304_s29  ;;  %p1309_p1 = scmp.lt.s32.totalorder %s1044_s28, %s1044_s28 }
 0x1ef   :  { %v870_v33 = vsel %vm774_vm13, %v854_v54, 0.0  ;;  %v796_v2 = vsel %vm780_vm1, %v764_v51, 1.0  ;;  %v902_v39 = vmax.f32 %v277_v28, 0.0  ;;  %v810_v16 = vsub.f32 %v1719_v30, %v2190_v20  ;;  %p1310_p2 = scmp.lt.s32.totalorder %s1308_s30, %s1304_s29 }
 0x1f0   :  { %v886_v61 = vsub.f32 %v694_v4, %v870_v33  ;;  %1296 = vrcp.f32 %v796_v2  ;;  %v920_v5 = vmul.f32 %v904_v26, %v888_v22  ;;  %v697_v43 = vsub.f32 1.0, %v678_v24 }
 0x1f1   :  { %v1291_v19 = vpop.eup %1290  ;;  %v907_v23 = vmax.f32 %v282_v31, 0.0  ;;  %v812_v37 = vsub.f32 %v1719_v30, %v2214_v60  ;;  %v698_v20 = vsub.f32 1.0, %v680_v10  ;;  %v905_v46 = vmax.f32 %v280_v45, 0.0  ;;  %p1311_p3 = por %p1310_p2, %p1309_p1 }
 0x1f2   :  { %v684_v58 = vmul.f32 %v1291_v19, %v652_v18  ;;  %941 = vadd.xlane.f32.xlu0 %v917_v3  ;;  %v918_v59 = vmul.f32 %v902_v39, %v886_v61  ;;  %v906_v44 = vmax.f32 %v281_v50, 0.0  ;;  %v908_v63 = vmax.f32 %v283_v53, 0.0  ;;  %v985_v24 = vpop.xlane.xlu1 %984 }
 0x1f3   :  { %v1293_v48 = vpop.eup %1292  ;;  %v923_v52 = vmul.f32 %v907_v23, %v891_v11  ;;  %v1010_v13 = vadd.f32 %v981_v12, %v979_v32  ;;  %p1312_p4 = pnand %p1311_p3, %p1305_p0 }
 0x1f4   :  { %v838_v9 = vmul.f32 %v1293_v48, %v809_v0  ;;  %v700_v49 = vsub.f32 1.0, %v684_v58 }
 0x1f5   :  { %v1011_v6 = vadd.f32 %v1010_v13, %v983_v36 }
 0x1f6   :  { %947 = vadd.xlane.f32.xlu0 %v920_v5  ;;  %v857_v38 = vsub.f32 1.0, %v838_v9  ;;  %v987_v1 = vpop.xlane.xlu1 %986 }
 0x1f7   :  { %v1295_v41 = vpop.eup %1294  ;;  %v1012_v56 = vadd.f32 %v1011_v6, %v985_v24 }
 0x1f8   :  { %v873_v62 = vsel %vm777_vm14, %v857_v38, 0.0  ;;  %v840_v25 = vmul.f32 %v1295_v41, %v810_v16 }
 0x1f9   :  { %v889_v47 = vsub.f32 %v697_v43, %v873_v62  ;;  %v1013_v11 = vadd.f32 %v1012_v56, %v987_v1 }
 0x1fa   :  { %v1297_v7 = vpop.eup %1296  ;;  %943 = vadd.xlane.f32.xlu0 %v918_v59  ;;  %v858_v21 = vsub.f32 1.0, %v840_v25  ;;  %v989_v8 = vpop.xlane.xlu1 %988 }
 0x1fb   :  { %v844_v34 = vmul.f32 %v1297_v7, %v812_v37  ;;  %v921_v30 = vmul.f32 %v905_v46, %v889_v47  ;;  %v1014_v35 = vadd.f32 %v1013_v11, %v989_v8  ;;  %v1302_v37 = vld [vmem:[#allocation2] sm:$0x1] }
 0x1fc   :  { %v874_v27 = vsel %vm778_vm15, %v858_v21, 0.0 }
 0x1fd   :  { %v890_v57 = vsub.f32 %v698_v20, %v874_v27  ;;  %v860_v40 = vsub.f32 1.0, %v844_v34 }
 0x1fe   :  { %953 = vadd.xlane.f32.xlu0 %v923_v52  ;;  %v991_v22 = vpop.xlane.xlu1 %990 }
 0x1ff   :  { %v876_v14 = vsel %vm780_vm1, %v860_v40, 0.0  ;;  %v922_v55 = vmul.f32 %v906_v44, %v890_v57  ;;  %v1015_v54 = vadd.f32 %v1014_v35, %v991_v22  ;;  %v1031_v35 = vld [vmem:[#allocation7] sm:$0x1] }
 0x200   :  { %v892_v60 = vsub.f32 %v700_v49, %v876_v14 }
 0x202   :  { %949 = vadd.xlane.f32.xlu0 %v921_v30  ;;  %v924_v42 = vmul.f32 %v908_v63, %v892_v60  ;;  %v993_v29 = vpop.xlane.xlu1 %992 }
 0x203   :  { %v1016_v51 = vadd.f32 %v1015_v54, %v993_v29 }
 0x206   :  { %951 = vadd.xlane.f32.xlu0 %v922_v55 }
 0x20a   :  { %955 = vadd.xlane.f32.xlu0 %v924_v42 }
 0x242   :  { %v930_v26 = vpop.xlane.xlu0 %929 }
 0x243   :  { %v928_v15 = vpop.xlane.xlu1 %927 }
 0x246   :  { %v926_v48 = vpop.xlane.xlu0 %925 }
 0x247   :  { %v995_v17 = vpop.xlane.xlu1 %994  ;;  %v957_v47 = vadd.f32 %v928_v15, %v926_v48 }
 0x248   :  { %v1017_v4 = vadd.f32 %v1016_v51, %v995_v17 }
 0x249   :  { %v958_v20 = vadd.f32 %v957_v47, %v930_v26 }
 0x24a   :  { %v932_v31 = vpop.xlane.xlu0 %931 }
 0x24b   :  { %v997_v10 = vpop.xlane.xlu1 %996  ;;  %v959_v52 = vadd.f32 %v958_v20, %v932_v31 }
 0x24c   :  { %v1018_v33 = vadd.f32 %v1017_v4, %v997_v10 }
 0x24e   :  { %v938_v43 = vpop.xlane.xlu0 %937 }
 0x24f   :  { %v999_v18 = vpop.xlane.xlu1 %998 }
 0x250   :  { %v1019_v61 = vadd.f32 %v1018_v33, %v999_v18 }
 0x252   :  { %v934_v25 = vpop.xlane.xlu0 %933 }
 0x253   :  { %v1001_v2 = vpop.xlane.xlu1 %1000  ;;  %v960_v46 = vadd.f32 %v959_v52, %v934_v25 }
 0x254   :  { %v1020_v19 = vadd.f32 %v1019_v61, %v1001_v2 }
 0x257   :  { %v1003_v3 = vpop.xlane.xlu1 %1002 }
 0x258   :  { %v1021_v28 = vadd.f32 %v1020_v19, %v1003_v3 }
 0x25b   :  { %v1005_v58 = vpop.xlane.xlu1 %1004 }
 0x25c   :  { %v1022_v0 = vadd.f32 %v1021_v28, %v1005_v58 }
 0x25f   :  { %v1007_v5 = vpop.xlane.xlu1 %1006 }
 0x260   :  { %v1023_v39 = vadd.f32 %v1022_v0, %v1007_v5 }
 0x263   :  { %v1009_v9 = vpop.xlane.xlu1 %1008 }
 0x264   :  { %v1024_v38 = vadd.f32 %v1023_v39, %v1009_v9 }
 0x266   :  { %v1025_v16 = vrot.slane %v1024_v38, 4 }
 0x268   :  { %v1026_v41 = vadd.f32 %v1025_v16, %v1024_v38 }
 0x26a   :  { %v1027_v59 = vrot.slane %v1026_v41, 2 }
 0x26c   :  { %v1028_v23 = vadd.f32 %v1027_v59, %v1026_v41 }
 0x26e   :  { %v1029_v62 = vrot.slane %v1028_v23, 1 }
 0x270   :  { %v1030_v45 = vadd.f32 %v1029_v62, %v1028_v23 }
 0x272   :  { %v1035_v7 = vadd.f32 %v1302_v37, %v1030_v45 }
 0x273   :  { %v940_v21 = vpop.xlane.xlu0 %939 }
 0x274   :  { %1036 = vst.msk [vmem:[#allocation2] sm:$0x1] %vm22_vm0, %v1035_v7 }
 0x277   :  { %v936_v34 = vpop.xlane.xlu0 %935 }
 0x278   :  { %v961_v50 = vadd.f32 %v960_v46, %v936_v34 }
 0x27a   :  { %v962_v40 = vadd.f32 %v961_v50, %v938_v43 }
 0x27b   :  { %v946_v27 = vpop.xlane.xlu0 %945 }
 0x27c   :  { %v963_v14 = vadd.f32 %v962_v40, %v940_v21 }
 0x27f   :  { %v942_v57 = vpop.xlane.xlu0 %941 }
 0x280   :  { %v964_v30 = vadd.f32 %v963_v14, %v942_v57 }
 0x283   :  { %v948_v49 = vpop.xlane.xlu0 %947 }
 0x287   :  { %v944_v44 = vpop.xlane.xlu0 %943 }
 0x288   :  { %v965_v60 = vadd.f32 %v964_v30, %v944_v44 }
 0x28a   :  { %v966_v55 = vadd.f32 %v965_v60, %v946_v27 }
 0x28b   :  { %v954_v53 = vpop.xlane.xlu0 %953 }
 0x28c   :  { %v967_v42 = vadd.f32 %v966_v55, %v948_v49 }
 0x28f   :  { %v950_v63 = vpop.xlane.xlu0 %949 }
 0x290   :  { %v968_v12 = vadd.f32 %v967_v42, %v950_v63 }
 0x293   :  { %v952_v36 = vpop.xlane.xlu0 %951 }
 0x294   :  { %v969_v24 = vadd.f32 %v968_v12, %v952_v36 }
 0x296   :  { %v970_v1 = vadd.f32 %v969_v24, %v954_v53 }
 0x297   :  { %v956_v32 = vpop.xlane.xlu0 %955 }
 0x298   :  { %v971_v13 = vadd.f32 %v970_v1, %v956_v32 }
 0x29a   :  { %v972_v6 = vrot.slane %v971_v13, 4 }
 0x29c   :  { %v973_v8 = vadd.f32 %v972_v6, %v971_v13 }
 0x29e   :  { %v974_v56 = vrot.slane %v973_v8, 2 }
 0x2a0   :  { %v975_v22 = vadd.f32 %v974_v56, %v973_v8 }
 0x2a2   :  { %v976_v11 = vrot.slane %v975_v22, 1 }
 0x2a4   :  { %v977_v29 = vadd.f32 %v976_v11, %v975_v22 }
 0x2a6   :  { %v1032_v54 = vadd.f32 %v1031_v35, %v977_v29 }
 0x2a8   :  { %1034 = vst.msk [vmem:[#allocation7] sm:$0x1] %vm22_vm0, %v1032_v54 }
 0x2a9   :  { %1315 = shalt.err (!%p1312_p4)
}
 0x2aa   :  { %s1316_s6 = scalar_lea.hbm %s2282_s3, 16 }
 0x2ab   :  { %p1317_p5 = scmp.ne.s32.totalorder %s2282_s3, %s1316_s6  ;;  %p1320_p6 = scmp.lt.u32.totalorder %s1316_s6, %s2282_s3 }
 0x2ad   :  { %p1322_p7 = pnand %p1320_p6, %p1317_p5 }
 0x2af   :  { %1325 = shalt.err (!%p1322_p7)
}
 0x2b0   :  { %1046 = dma.vmem_to_hbm [thread:$0]  %s1044_s28, 16, %s2282_s3, [#allocation8]  }
 0x2b1   :  { %1326 = dma.done.wait [#allocation8], 16  }
 0x2b2   :  { %1327 = vsyncadd [#allocation8], 4294967280 }
 0x2b3   :  { %1050 = vsyncpa [#allocation8], 1 }

</bundles_post_ra>
